<compile_context>
chip_gen: v6e
topology: v6e:2x2x1
jax: 0.10.0
libtpu: 0.0.40
codegen_flags: <defaults>
</compile_context>

<pallas_src>
import functools

import jax
import jax.numpy as jnp
from jax.experimental import pallas as pl
from jax.experimental.pallas import tpu as pltpu

_LANES = 128
_SUBLANES = 8
_MAX_BLOCK_ROWS = 4096        # (4096, 128) f32 tile = 2 MiB per operand per buffer


def _round_up(x: int, m: int) -> int:
    return (x + m - 1) // m * m


def _mse_kernel(pred_ref, real_ref, out_ref, acc_sc, *, inv_n: float):
    step = pl.program_id(0)

    @pl.when(step == 0)
    def _():
        acc_sc[...] = jnp.zeros_like(acc_sc)

    d = real_ref[...] - pred_ref[...]
    sq = d * d
    br = sq.shape[0]
    # Fold the tile into a vreg-shaped (8, 128) partial sum.  The reshape keeps
    # the (8, 128) tiled layout (it is a view), so the reduction over axis 0 is
    # just elementwise vreg adds on the VPU -- no cross-lane/XLU traffic in the
    # streaming loop.
    acc_sc[...] += jnp.sum(sq.reshape(br // _SUBLANES, _SUBLANES, _LANES), axis=0)

    @pl.when(step == pl.num_programs(0) - 1)
    def _():
        total = jnp.sum(acc_sc[...], axis=(0, 1), keepdims=True)     # (1, 1)
        out_ref[...] = total * inv_n


def mse(pred, real):
    """Pallas-TPU equivalent of the PyTorch `MSE` module's forward."""
    assert pred.shape == real.shape, (pred.shape, real.shape)
    n = int(pred.size)
    p = jnp.asarray(pred, jnp.float32).reshape(-1)
    r = jnp.asarray(real, jnp.float32).reshape(-1)

    rows = max(1, -(-n // _LANES))
    block_rows = min(_MAX_BLOCK_ROWS, _round_up(rows, _SUBLANES))
    padded_rows = _round_up(rows, block_rows)
    padded_n = padded_rows * _LANES
    if padded_n != n:
        # Zero padding on BOTH operands -> diff is exactly 0 there, so the sum
        # of squared diffs is unchanged; we divide by the true n in-kernel.
        p = jnp.pad(p, (0, padded_n - n))
        r = jnp.pad(r, (0, padded_n - n))
    p2 = p.reshape(padded_rows, _LANES)
    r2 = r.reshape(padded_rows, _LANES)

    grid = (padded_rows // block_rows,)
    kernel = functools.partial(_mse_kernel, inv_n=1.0 / float(n))

    out = pl.pallas_call(
        kernel,
        grid=grid,
        in_specs=[
            pl.BlockSpec((block_rows, _LANES), lambda i: (i, 0)),
            pl.BlockSpec((block_rows, _LANES), lambda i: (i, 0)),
        ],
        out_specs=pl.BlockSpec((1, 1), lambda i: (0, 0)),
        out_shape=jax.ShapeDtypeStruct((1, 1), jnp.float32),
        scratch_shapes=[pltpu.VMEM((_SUBLANES, _LANES), jnp.float32)],
        compiler_params=pltpu.CompilerParams(dimension_semantics=("arbitrary",)),
    )(p2, r2)
    return out[0, 0]


if __name__ == "__main__":
    key = jax.random.PRNGKey(0)
    kp, kr, kp2, kr2 = jax.random.split(key, 4)

    # Prediction / target tensors (any shape is valid for MSE).
    pred = jax.random.normal(kp, (2, 4, 16, 16), jnp.float32)
    real = jax.random.normal(kr, (2, 4, 16, 16), jnp.float32)

    mse_fn = jax.jit(mse)
    out = mse_fn(pred, real)
    jax.block_until_ready(out)
    ref = jnp.mean((real - pred) ** 2)
    assert out.shape == ()
    assert jnp.allclose(out, ref, rtol=1e-5, atol=1e-6), (out, ref)

    # Ragged element count (exercises the zero-padding path).
    pred_b = jax.random.normal(kp2, (3, 5, 7), jnp.float32)
    real_b = jax.random.normal(kr2, (3, 5, 7), jnp.float32)
    out_b = jax.jit(mse)(pred_b, real_b)
    jax.block_until_ready(out_b)
    ref_b = jnp.mean((real_b - pred_b) ** 2)
    assert jnp.allclose(out_b, ref_b, rtol=1e-5, atol=1e-6), (out_b, ref_b)

    print("KERNEL_OK")
</pallas_src>

<mosaic_0001>
module attributes {stable_mosaic.version = 11 : i64} {
  func.func @_mse_kernel(%arg0: i32, %arg1: memref<16x128xf32, #tpu.memory_space<vmem>>, %arg2: memref<16x128xf32, #tpu.memory_space<vmem>>, %arg3: memref<1x1xf32, #tpu.memory_space<vmem>>, %arg4: memref<8x128xf32, #tpu.memory_space<vmem>>) attributes {dimension_semantics = [#tpu.dimension_semantics<arbitrary>], iteration_bounds = array<i64: 1>, scalar_prefetch = 0 : i64, scratch_operands = 1 : i64, tpu.core_type = #tpu.core_type<tc>, window_params = [{transform_indices = @transform_0, window_bounds = array<i64: 16, 128>}, {transform_indices = @transform_1, window_bounds = array<i64: 16, 128>}, {pipeline_mode = #tpu.pipeline_mode<synchronous>, transform_indices = @transform_2, window_bounds = array<i64: 1, 1>}]} {
    %c0_i32 = arith.constant 0 : i32
    %0 = arith.cmpi eq, %arg0, %c0_i32 : i32
    %1 = arith.extui %0 : i1 to i32
    %c0_i32_0 = arith.constant 0 : i32
    %2 = arith.cmpi ne, %1, %c0_i32_0 : i32
    scf.if %2 {
      %cst_10 = arith.constant 0.000000e+00 : f32
      %15 = vector.broadcast %cst_10 : f32 to vector<8x128xf32>
      %c0_11 = arith.constant 0 : index
      %c0_12 = arith.constant 0 : index
      %16 = vector.load %arg4[%c0_11, %c0_12] : memref<8x128xf32, #tpu.memory_space<vmem>>, vector<8x128xf32>
      tpu.vector_store %arg4[%c0_11, %c0_12], %15 {strides = array<i32>} : memref<8x128xf32, #tpu.memory_space<vmem>>, vector<8x128xf32>,
    } else {
    }
    %c0 = arith.constant 0 : index
    %c0_1 = arith.constant 0 : index
    %3 = vector.load %arg2[%c0, %c0_1] : memref<16x128xf32, #tpu.memory_space<vmem>>, vector<16x128xf32>
    %c0_2 = arith.constant 0 : index
    %c0_3 = arith.constant 0 : index
    %4 = vector.load %arg1[%c0_2, %c0_3] : memref<16x128xf32, #tpu.memory_space<vmem>>, vector<16x128xf32>
    %5 = arith.subf %3, %4 : vector<16x128xf32>
    %6 = arith.mulf %5, %5 : vector<16x128xf32>
    %c0_4 = arith.constant 0 : index
    %c0_5 = arith.constant 0 : index
    %7 = vector.load %arg4[%c0_4, %c0_5] : memref<8x128xf32, #tpu.memory_space<vmem>>, vector<8x128xf32>
    %8 = vector.shape_cast %6 : vector<16x128xf32> to vector<2x8x128xf32>
    %cst = arith.constant dense<0.000000e+00> : vector<8x128xf32>
    %9 = vector.multi_reduction <add>, %8, %cst [0] : vector<2x8x128xf32> to vector<8x128xf32>
    %10 = arith.addf %7, %9 : vector<8x128xf32>
    %c0_6 = arith.constant 0 : index
    %c0_7 = arith.constant 0 : index
    %11 = vector.load %arg4[%c0_6, %c0_7] : memref<8x128xf32, #tpu.memory_space<vmem>>, vector<8x128xf32>
    tpu.vector_store %arg4[%c0_6, %c0_7], %10 {strides = array<i32>} : memref<8x128xf32, #tpu.memory_space<vmem>>, vector<8x128xf32>,
    %c0_i32_8 = arith.constant 0 : i32
    %12 = arith.cmpi eq, %arg0, %c0_i32_8 : i32
    %13 = arith.extui %12 : i1 to i32
    %c0_i32_9 = arith.constant 0 : i32
    %14 = arith.cmpi ne, %13, %c0_i32_9 : i32
    scf.if %14 {
      %c0_10 = arith.constant 0 : index
      %c0_11 = arith.constant 0 : index
      %15 = vector.load %arg4[%c0_10, %c0_11] : memref<8x128xf32, #tpu.memory_space<vmem>>, vector<8x128xf32>
      %16 = vector.shape_cast %15 : vector<8x128xf32> to vector<1x8x128xf32>
      %cst_12 = arith.constant dense<0.000000e+00> : vector<1xf32>
      %17 = vector.multi_reduction <add>, %16, %cst_12 [1, 2] : vector<1x8x128xf32> to vector<1xf32>
      %18 = vector.shape_cast %17 : vector<1xf32> to vector<1x1x1xf32>
      %19 = vector.extract %18[0, 0, 0] : f32 from vector<1x1x1xf32>
      %20 = vector.broadcast %19 : f32 to vector<1x1xf32>
      %cst_13 = arith.constant 4.8828125E-4 : f32
      %21 = vector.broadcast %cst_13 : f32 to vector<1x1xf32>
      %22 = arith.mulf %20, %21 : vector<1x1xf32>
      %c0_14 = arith.constant 0 : index
      %c0_15 = arith.constant 0 : index
      %23 = vector.load %arg3[%c0_14, %c0_15] : memref<1x1xf32, #tpu.memory_space<vmem>>, vector<1x1xf32>
      tpu.vector_store %arg3[%c0_14, %c0_15], %22 {strides = array<i32>} : memref<1x1xf32, #tpu.memory_space<vmem>>, vector<1x1xf32>,
    } else {
    }
    return
  }
  func.func @transform_0(%arg0: i32) -> (i32, i32) {
    %c0_i32 = arith.constant 0 : i32
    %c0_i32_0 = arith.constant 0 : i32
    return %arg0, %c0_i32 : i32, i32
  }
  func.func @transform_1(%arg0: i32) -> (i32, i32) {
    %c0_i32 = arith.constant 0 : i32
    %c0_i32_0 = arith.constant 0 : i32
    return %arg0, %c0_i32 : i32, i32
  }
  func.func @transform_2(%arg0: i32) -> (i32, i32) {
    %c0_i32 = arith.constant 0 : i32
    %c0_i32_0 = arith.constant 0 : i32
    %c0_i32_1 = arith.constant 0 : i32
    return %c0_i32, %c0_i32_0 : i32, i32
  }
}

</mosaic_0001>

<bundles_post_ra>
// kernel: mse.1
= control target key start
LH: loop header
LB: loop body
LE: loop exit
PB: predicated region body
PF: predicated region fallthrough
CT: control target
= control target key end

     0   :  { %s116_s0 = inlined_call_operand.vmem [shape: f32[16,128], index: 0, kind: input, shape index: {}]   ;;  %s117_s1 = inlined_call_operand.vmem [shape: f32[16,128], index: 1, kind: input, shape index: {}]   ;;  %s118_s2 = inlined_call_operand.hbm [shape: f32[1,1], index: 2, kind: output, shape index: {}]  }
   0x1   :  { %v17_v0 = vld [vmem:[%s117_s1] sm:$0xff]  ;;  %v18_v1 = vld [vmem:[%s117_s1 + $0x8] sm:$0xff] }
   0x2   :  { %v19_v2 = vld [vmem:[%s116_s0] sm:$0xff]  ;;  %v20_v3 = vld [vmem:[%s116_s0 + $0x8] sm:$0xff] }
   0x3   :  { %v21_v4 = vsub.f32 %v17_v0, %v19_v2 }
   0x4   :  { %7 = vsyncpa [#allocation4], 0  ;;  %v22_v5 = vsub.f32 %v18_v1, %v20_v3  ;;  %s85_s1 = smov [#allocation3]   ;;  %vm44_vm0 = vcmask 0  }
   0x5   :  { %v23_v6 = vmul.f32 %v21_v4, %v21_v4  ;;  %s52_s17 = sshll.u32 %s85_s1, 4  ;;  %s53_s17 = int_to_ptr.vmem [resolvable:$true] %s52_s17 }
   0x6   :  { %v24_v7 = vmul.f32 %v22_v5, %v22_v5  ;;  %s63_s0 = scalar_lea.vmem %s53_s17, 16  ;;  %s67_s19 = scalar_lea.vmem %s53_s17, 32 }
   0x7   :  { %p64_p0 = scmp.ne.s32.totalorder %s53_s17, %s63_s0  ;;  %p68_p1 = scmp.lt.s32.totalorder %s53_s17, %s53_s17 }
   0x8   :  { %v26_v8 = vadd.f32 %v24_v7, %v23_v6  ;;  %p69_p2 = scmp.lt.s32.totalorder %s67_s19, %s63_s0 }
   0xa   :  { %33 = vadd.xlane.f32.xlu0 %v26_v8  ;;  %p70_p3 = por %p69_p2, %p68_p1 }
   0xc   :  { %p71_p4 = pnand %p70_p3, %p64_p0 }
  0x93   :  { %v34_v9 = vpop.xlane.xlu0 %33 }
  0x94   :  { %v35_v10 = vrot.slane %v34_v9, 4 }
  0x96   :  { %v36_v11 = vadd.f32 %v35_v10, %v34_v9 }
  0x98   :  { %v37_v12 = vrot.slane %v36_v11, 2 }
  0x9a   :  { %v38_v13 = vadd.f32 %v37_v12, %v36_v11 }
  0x9c   :  { %v39_v14 = vrot.slane %v38_v13, 1 }
  0x9e   :  { %v40_v15 = vadd.f32 %v39_v14, %v38_v13 }
  0xa0   :  { %60 = vpush %v40_v15 }
  0xd1   :  { %s61_s18 = spop %60 }
  0xd2   :  { %v42_v16 = vstv %s61_s18 }
  0xd3   :  { %v43_v17 = vmul.f32 0.00048828125, %v42_v16 }
  0xd5   :  { %45 = vst.msk [vmem:[#allocation3] sm:$0x1] %vm44_vm0, %v43_v17 }
  0xd6   :  { %74 = shalt.err (!%p71_p4)
}
  0xd7   :  { %55 = dma.vmem_to_hbm [thread:$0]  %s53_s17, 16, %s118_s2, [#allocation4]  }
  0xd8   :  { %83 = dma.done.wait [#allocation4], 16  }
  0xd9   :  { %84 = vsyncadd [#allocation4], 4294967280 }
  0xda   :  { %59 = vsyncpa [#allocation4], 1 }

</bundles_post_ra>
